<compile_context>
chip_gen: v7x
topology: tpu7x:2x2x1
jax: 0.10.0
libtpu: 0.0.40
codegen_flags: <defaults>
</compile_context>

<pallas_src>
import jax
import jax.numpy as jnp
from jax.experimental import pallas as pl
from jax.experimental.pallas import tpu as pltpu


def _netd_kernel(x_ref, w1_ref, b1_ref, w2_ref, b2_ref, o_ref):
    # x_ref : (nc, TB)   batch on lanes -> lane-dense intermediates & output
    # w1_ref: (ndf, nc)  PyTorch nn.Linear(nc, ndf).weight layout (out, in)
    # b1_ref: (ndf, 1)   broadcasts across the lane (batch) axis
    # w2_ref: (ndf, 1)   = nn.Linear(ndf, 1).weight.T
    # b2_ref: (1,)       scalar bias in SMEM
    # o_ref : (1, TB)
    # Layer 1 on the MXU; operands kept in their input dtype (bf16-friendly on v5e),
    # accumulation in f32.
    h = jnp.dot(w1_ref[...], x_ref[...], preferred_element_type=jnp.float32)
    h = jnp.maximum(h + b1_ref[...], 0.0)                       # bias + ReLU (VPU)
    # Layer 2 (out_features = 1): VPU multiply + cross-sublane reduce instead of a
    # degenerate N=1 MXU matmul.
    logits = jnp.sum(h * w2_ref[...], axis=0, keepdims=True) + b2_ref[0]
    # Sigmoid: exp and approximate reciprocal both run on the EUP (no VALU divide).
    o_ref[...] = pl.reciprocal(1.0 + jnp.exp(-logits), approx=True).astype(o_ref.dtype)


def netd_forward(x, w1, b1, w2, b2, *, tb=None):
    """Forward pass of _netD: Linear(nc,ndf) -> ReLU -> Linear(ndf,1) -> Sigmoid,
    then .view(-1, 1).squeeze(1)  -> shape (B,).

    x  : (B, nc)       natural layout; transposed to (nc, B) before the kernel
    w1 : (ndf, nc)     PyTorch weight layout
    b1 : (ndf, 1)
    w2 : (ndf, 1)      PyTorch (1, ndf) weight, transposed
    b2 : (1,)
    """
    B, nc = x.shape
    ndf = w1.shape[0]
    xt = x.T  # (nc, B): batch on the lane axis

    # Batch tile: biggest block that satisfies the (8,128) lane rule.  Tiny /
    # ragged batches run as a single block; large multiples of 128 get tiled so
    # the 'parallel' grid can be sharded across TensorCores (v7x) and per-block
    # VMEM stays small.
    if tb is None:
        tb = min(B, 1024) if B % 128 == 0 else B
    grid = (pl.cdiv(B, tb),)

    out = pl.pallas_call(
        _netd_kernel,
        out_shape=jax.ShapeDtypeStruct((1, B), jnp.float32),
        grid_spec=pltpu.PrefetchScalarGridSpec(
            num_scalar_prefetch=0,
            grid=grid,
            in_specs=[
                pl.BlockSpec((nc, tb), lambda i: (0, i)),     # x^T: tiled over batch
                pl.BlockSpec((ndf, nc), lambda i: (0, 0)),    # W1: resident
                pl.BlockSpec((ndf, 1), lambda i: (0, 0)),     # b1: resident
                pl.BlockSpec((ndf, 1), lambda i: (0, 0)),     # w2: resident
                pl.BlockSpec(memory_space=pltpu.MemorySpace.SMEM),  # b2 scalar
            ],
            out_specs=pl.BlockSpec((1, tb), lambda i: (0, i)),  # lane-dense output
        ),
        compiler_params=pltpu.CompilerParams(
            dimension_semantics=("parallel",)),
    )(xt, w1, b1, w2, b2)

    # .view(-1, 1).squeeze(1) -> (B,)
    return out.reshape(-1)


def init_params(key, nc, ndf):
    """Deterministic init mimicking PyTorch nn.Linear default:
    U(-1/sqrt(fan_in), 1/sqrt(fan_in)) for both weight and bias, stored in the
    kernel's (transposed-problem) layouts."""
    k1, k2, k3, k4 = jax.random.split(key, 4)
    bound1 = 1.0 / jnp.sqrt(nc)
    bound2 = 1.0 / jnp.sqrt(ndf)
    w1 = jax.random.uniform(k1, (ndf, nc), jnp.float32, -bound1, bound1)   # (out, in)
    b1 = jax.random.uniform(k2, (ndf, 1), jnp.float32, -bound1, bound1)
    w2 = jax.random.uniform(k3, (ndf, 1), jnp.float32, -bound2, bound2)    # (1, ndf).T
    b2 = jax.random.uniform(k4, (1,), jnp.float32, -bound2, bound2)
    return w1, b1, w2, b2


def _reference(x, w1, b1, w2, b2):
    h = jnp.maximum(x @ w1.T + b1.reshape(1, -1), 0.0)
    return jax.nn.sigmoid(h @ w2 + b2.reshape(1, 1)).reshape(-1)


if __name__ == "__main__":
    # Small shapes consistent with the module: batch=8, nc=4, ndf=32.
    B, nc, ndf = 8, 4, 32
    key = jax.random.PRNGKey(0)
    kx, kx2, kp = jax.random.split(key, 3)
    x = jax.random.normal(kx, (B, nc), jnp.float32)
    w1, b1, w2, b2 = init_params(kp, nc, ndf)

    out = jax.block_until_ready(netd_forward(x, w1, b1, w2, b2))
    ref = _reference(x, w1, b1, w2, b2)
    assert out.shape == (B,)
    # Tolerance accounts for the EUP approximate reciprocal in the sigmoid.
    assert jnp.allclose(out, ref, atol=5e-3, rtol=5e-3)

    # Exercise the multi-block batch-tiled ('parallel') path as well.
    B2 = 384
    x2 = jax.random.normal(kx2, (B2, nc), jnp.float32)
    out2 = jax.block_until_ready(netd_forward(x2, w1, b1, w2, b2, tb=128))
    ref2 = _reference(x2, w1, b1, w2, b2)
    assert out2.shape == (B2,)
    assert jnp.allclose(out2, ref2, atol=5e-3, rtol=5e-3)

    print("KERNEL_OK")
</pallas_src>

<mosaic_0001>
module attributes {stable_mosaic.version = 11 : i64} {
  func.func @_netd_kernel(%arg0: i32, %arg1: memref<4x8xf32, #tpu.memory_space<vmem>>, %arg2: memref<32x4xf32, #tpu.memory_space<vmem>>, %arg3: memref<32x1xf32, #tpu.memory_space<vmem>>, %arg4: memref<32x1xf32, #tpu.memory_space<vmem>>, %arg5: memref<1xf32, #tpu.memory_space<smem>>, %arg6: memref<1x8xf32, #tpu.memory_space<vmem>>) attributes {dimension_semantics = [#tpu.dimension_semantics<parallel>], iteration_bounds = array<i64: 1>, scalar_prefetch = 0 : i64, scratch_operands = 0 : i64, tpu.core_type = #tpu.core_type<tc>, window_params = [{transform_indices = @transform_0, window_bounds = array<i64: 4, 8>}, {pipeline_mode = #tpu.pipeline_mode<synchronous>, transform_indices = @transform_1, window_bounds = array<i64: 32, 4>}, {pipeline_mode = #tpu.pipeline_mode<synchronous>, transform_indices = @transform_2, window_bounds = array<i64: 32, 1>}, {pipeline_mode = #tpu.pipeline_mode<synchronous>, transform_indices = @transform_3, window_bounds = array<i64: 32, 1>}, {transform_indices = @transform_4, window_bounds = array<i64: 1>}, {transform_indices = @transform_5, window_bounds = array<i64: 1, 8>}]} {
    %c0 = arith.constant 0 : index
    %c0_0 = arith.constant 0 : index
    %0 = vector.load %arg2[%c0, %c0_0] : memref<32x4xf32, #tpu.memory_space<vmem>>, vector<32x4xf32>
    %c0_1 = arith.constant 0 : index
    %c0_2 = arith.constant 0 : index
    %1 = vector.load %arg1[%c0_1, %c0_2] : memref<4x8xf32, #tpu.memory_space<vmem>>, vector<4x8xf32>
    %cst = arith.constant dense<0.000000e+00> : vector<32x8xf32>
    %2 = tpu.matmul %0, %1, %cst {dimension_numbers = #tpu.dot_dimension_numbers<[1], [0], [0], [1], [0, 0, 1, 1], [], []>} : vector<32x4xf32>, vector<4x8xf32>, vector<32x8xf32> -> vector<32x8xf32>
    %c0_3 = arith.constant 0 : index
    %c0_4 = arith.constant 0 : index
    %3 = vector.load %arg3[%c0_3, %c0_4] : memref<32x1xf32, #tpu.memory_space<vmem>>, vector<32x1xf32>
    %4 = vector.broadcast %3 : vector<32x1xf32> to vector<32x8xf32>
    %5 = arith.addf %2, %4 : vector<32x8xf32>
    %cst_5 = arith.constant 0.000000e+00 : f32
    %6 = vector.broadcast %cst_5 : f32 to vector<32x8xf32>
    %7 = arith.maximumf %5, %6 : vector<32x8xf32>
    %c0_6 = arith.constant 0 : index
    %c0_7 = arith.constant 0 : index
    %8 = vector.load %arg4[%c0_6, %c0_7] : memref<32x1xf32, #tpu.memory_space<vmem>>, vector<32x1xf32>
    %9 = vector.broadcast %8 : vector<32x1xf32> to vector<32x8xf32>
    %10 = arith.mulf %7, %9 : vector<32x8xf32>
    %cst_8 = arith.constant dense<0.000000e+00> : vector<8xf32>
    %11 = vector.multi_reduction <add>, %10, %cst_8 [0] : vector<32x8xf32> to vector<8xf32>
    %12 = vector.shape_cast %11 : vector<8xf32> to vector<1x8xf32>
    %c0_9 = arith.constant 0 : index
    %13 = memref.load %arg5[%c0_9] : memref<1xf32, #tpu.memory_space<smem>>
    %14 = vector.broadcast %13 : f32 to vector<1x8xf32>
    %15 = arith.addf %12, %14 : vector<1x8xf32>
    %cst_10 = arith.constant 0.000000e+00 : f32
    %16 = vector.broadcast %cst_10 : f32 to vector<1x8xf32>
    %17 = arith.subf %16, %15 : vector<1x8xf32>
    %18 = math.exp %17 : vector<1x8xf32>
    %cst_11 = arith.constant 1.000000e+00 : f32
    %19 = vector.broadcast %cst_11 : f32 to vector<1x8xf32>
    %20 = arith.addf %19, %18 : vector<1x8xf32>
    %21 = tpu.reciprocal %20 {approx = true} : vector<1x8xf32> -> vector<1x8xf32>
    %c0_12 = arith.constant 0 : index
    %c0_13 = arith.constant 0 : index
    %22 = vector.load %arg6[%c0_12, %c0_13] : memref<1x8xf32, #tpu.memory_space<vmem>>, vector<1x8xf32>
    tpu.vector_store %arg6[%c0_12, %c0_13], %21 {strides = array<i32>} : memref<1x8xf32, #tpu.memory_space<vmem>>, vector<1x8xf32>,
    return
  }
  func.func @transform_0(%arg0: i32) -> (i32, i32) {
    %c0_i32 = arith.constant 0 : i32
    %c0_i32_0 = arith.constant 0 : i32
    return %c0_i32, %arg0 : i32, i32
  }
  func.func @transform_1(%arg0: i32) -> (i32, i32) {
    %c0_i32 = arith.constant 0 : i32
    %c0_i32_0 = arith.constant 0 : i32
    %c0_i32_1 = arith.constant 0 : i32
    return %c0_i32, %c0_i32_0 : i32, i32
  }
  func.func @transform_2(%arg0: i32) -> (i32, i32) {
    %c0_i32 = arith.constant 0 : i32
    %c0_i32_0 = arith.constant 0 : i32
    %c0_i32_1 = arith.constant 0 : i32
    return %c0_i32, %c0_i32_0 : i32, i32
  }
  func.func @transform_3(%arg0: i32) -> (i32, i32) {
    %c0_i32 = arith.constant 0 : i32
    %c0_i32_0 = arith.constant 0 : i32
    %c0_i32_1 = arith.constant 0 : i32
    return %c0_i32, %c0_i32_0 : i32, i32
  }
  func.func @transform_4(%arg0: i32) -> i32 {
    %c0_i32 = arith.constant 0 : i32
    %c0_i32_0 = arith.constant 0 : i32
    return %c0_i32 : i32
  }
  func.func @transform_5(%arg0: i32) -> (i32, i32) {
    %c0_i32 = arith.constant 0 : i32
    %c0_i32_0 = arith.constant 0 : i32
    return %c0_i32, %arg0 : i32, i32
  }
}

</mosaic_0001>

<bundles_post_ra>
// kernel: tpu_custom_call.1
= control target key start
LH: loop header
LB: loop body
LE: loop exit
PB: predicated region body
PF: predicated region fallthrough
CT: control target
= control target key end

     0   :  { %vm64_vm0 = vcmask 1043456   ;;  %vm51_vm1 = vcmask 31744   ;;  %s361_s0 = inlined_call_operand.vmem [shape: f32[4,8], index: 0, kind: input, shape index: {}]   ;;  %s362_s1 = inlined_call_operand.vmem [shape: f32[32,4], index: 1, kind: input, shape index: {}]   ;;  %s363_s2 = inlined_call_operand.vmem [shape: f32[32,1], index: 2, kind: input, shape index: {}]   ;;  %s364_s3 = inlined_call_operand.vmem [shape: f32[32,1], index: 3, kind: input, shape index: {}]   ;;  %s365_s4 = inlined_call_operand.<no memory space> [shape: f32[1], index: 4, kind: input, shape index: {}]   ;;  %s366_s5 = inlined_call_operand.hbm [shape: f32[1,8], index: 5, kind: output, shape index: {}]  }
   0x1   :  { %v26_v0 = vld [vmem:[%s361_s0] sm:$0xf]  ;;  %v24_v2 = vld [vmem:[%s362_s1 + $0x10] sm:$0xff]  ;;  %v23_v3 = vld [vmem:[%s362_s1 + $0x8] sm:$0xff] }
   0x2   :  { %v22_v1 = vld [vmem:[%s362_s1] sm:$0xff]  ;;  %233 = vmatprep.subr.msk.mxu0 %vm64_vm0, %v26_v0  ;;  %241 = vmatprep.subr.msk.mxu1 %vm64_vm0, %v26_v0  ;;  %v25_v4 = vld [vmem:[%s362_s1 + $0x18] sm:$0xff]  ;;  %v29_v6 = vld [vmem:[%s363_s2 + $0x10] sm:$0xff] }
   0x3   :  { %234 = vmatpush3.msk.msra.mxu0 %vm64_vm0, %v26_v0  ;;  %242 = vmatpush3.msk.msra.mxu1 %vm64_vm0, %v26_v0  ;;  %v27_v5 = vld [vmem:[%s363_s2] sm:$0xff] }
   0x4   :  { %235 = vmatprep.mubr.msk.f32.mxu0 %vm51_vm1, %v22_v1  ;;  %238 = vmatprep.mubr.msk.f32.mxu1 %vm51_vm1, %v24_v2 }
   0x5   :  { %236 = vmatmul.mubr.msk.f32.vlgmr.msra.gmra.mrb[0].mxu0 %vm51_vm1, %v23_v3  ;;  %239 = vmatmul.mubr.msk.f32.vlgmr.msra.gmra.mrb[0].mxu1 %vm51_vm1, %v25_v4 }
   0x6   :  { %11 = vsyncpa [#allocation4], 0  ;;  %v275_v7 = vmov 0   ;;  %v28_v8 = vld [vmem:[%s363_s2 + $0x8] sm:$0xff]  ;;  %v30_v9 = vld [vmem:[%s363_s2 + $0x18] sm:$0xff]  ;;  %vm185_vm2 = vcmask 64512   ;;  %v200_v50 = vstv %s365_s4 }
   0x7   :  { %245 = vset.pattern.permute.xlu0 %v275_v7  ;;  %246 = vset.pattern.permute.xlu1 %v275_v7  ;;  %v157_v10 = vld [vmem:[%s364_s3] sm:$0xff]  ;;  %v158_v11 = vld [vmem:[%s364_s3 + $0x8] sm:$0xff]  ;;  %v159_v12 = vld [vmem:[%s364_s3 + $0x10] sm:$0xff]  ;;  %s276_s17 = smov [#allocation3]   ;;  %vm207_vm3 = vcmask 57344  }
   0x8   :  { %33 = vperm.xlu0 %245, %v27_v5   ;;  %43 = vperm.xlu1 %246, %v29_v6   ;;  %v160_v13 = vld [vmem:[%s364_s3 + $0x18] sm:$0xff]  ;;  %s215_s18 = sshll.u32 %s276_s17, 4  ;;  %s216_s18 = int_to_ptr.vmem [resolvable:$true] %s215_s18 }
   0x9   :  { %s251_s19 = scalar_lea.vmem %s216_s18, 16  ;;  %s255_s20 = scalar_lea.vmem %s216_s18, 32 }
   0xa   :  { %p252_p0 = scmp.ne.s32.totalorder %s216_s18, %s251_s19  ;;  %p256_p1 = scmp.lt.s32.totalorder %s216_s18, %s216_s18 }
   0xb   :  { %p257_p2 = scmp.lt.s32.totalorder %s255_s20, %s251_s19 }
   0xc   :  { %38 = vperm.xlu0 %245, %v28_v8   ;;  %48 = vperm.xlu1 %246, %v30_v9  }
   0xd   :  { %p258_p3 = por %p257_p2, %p256_p1 }
   0xf   :  { %p259_p4 = pnand %p258_p3, %p252_p0 }
  0x10   :  { %163 = vperm.xlu0 %245, %v157_v10   ;;  %168 = vperm.xlu1 %246, %v158_v11  }
  0x14   :  { %173 = vperm.xlu0 %245, %v159_v12   ;;  %178 = vperm.xlu1 %246, %v160_v13  }
  0x87   :  { %v34_v14 = vpop.permute.xlu0 %33  ;;  %v44_v15 = vpop.permute.xlu1 %43 }
  0x8b   :  { %v39_v16 = vpop.permute.xlu0 %38  ;;  %v49_v17 = vpop.permute.xlu1 %48 }
  0x8f   :  { %v164_v18 = vpop.permute.xlu0 %163  ;;  %v169_v19 = vpop.permute.xlu1 %168 }
  0x93   :  { %v174_v32 = vpop.permute.xlu0 %173  ;;  %v179_v36 = vpop.permute.xlu1 %178 }
  0xd8   :  { %v237_v20 = vpop.f32.mrb[0].mxu0  ;;  %v240_v21 = vpop.f32.mrb[0].mxu1 }
  0xd9   :  { %v140_v22 = vadd.f32 %v237_v20, %v39_v16  ;;  %v150_v23 = vadd.f32 %v240_v21, %v49_v17  ;;  %v134_v24 = vpop.f32.mrb[1].mxu0  ;;  %v144_v25 = vpop.f32.mrb[1].mxu1 }
  0xda   :  { %v135_v26 = vadd.f32 %v134_v24, %v34_v14  ;;  %v145_v27 = vadd.f32 %v144_v25, %v44_v15 }
  0xdb   :  { %v154_v28 = vmax.f32 %v140_v22, 0.0  ;;  %v156_v29 = vmax.f32 %v150_v23, 0.0 }
  0xdc   :  { %v153_v30 = vmax.f32 %v135_v26, 0.0  ;;  %v155_v31 = vmax.f32 %v145_v27, 0.0 }
  0xdd   :  { %v182_v33 = vmul.f32 %v169_v19, %v154_v28  ;;  %v184_v38 = vmul.f32 %v179_v36, %v156_v29 }
  0xde   :  { %v181_v34 = vmul.f32 %v164_v18, %v153_v30  ;;  %v183_v35 = vmul.f32 %v174_v32, %v155_v31 }
  0xdf   :  { %v187_v37 = vsel %vm185_vm2, %v182_v33, 0.0  ;;  %v191_v43 = vsel %vm185_vm2, %v184_v38, 0.0 }
  0xe0   :  { %v186_v39 = vsel %vm185_vm2, %v181_v34, 0.0  ;;  %v189_v41 = vsel %vm185_vm2, %v183_v35, 0.0 }
  0xe1   :  { %v188_v40 = vadd.f32 %v187_v37, %v186_v39 }
  0xe3   :  { %v190_v42 = vadd.f32 %v189_v41, %v188_v40 }
  0xe5   :  { %v192_v44 = vadd.f32 %v191_v43, %v190_v42 }
  0xe7   :  { %v193_v45 = vrot.slane %v192_v44, 4 }
  0xe9   :  { %v194_v46 = vadd.f32 %v193_v45, %v192_v44 }
  0xeb   :  { %v195_v47 = vrot.slane %v194_v46, 2 }
  0xed   :  { %v196_v48 = vadd.f32 %v195_v47, %v194_v46 }
  0xef   :  { %v197_v49 = vrot.slane %v196_v48, 1 }
  0xf1   :  { %v198_v51 = vadd.f32 %v197_v49, %v196_v48 }
  0xf3   :  { %v201_v52 = vadd.f32 %v200_v50, %v198_v51 }
  0xf5   :  { %v202_v53 = vsub.f32 0.0, %v201_v52 }
  0xf7   :  { %v203_v54 = vmul.f32 1.442695, %v202_v53 }
  0xf9   :  { %247 = vpow2.f32 %v203_v54 }
 0x103   :  { %v248_v55 = vpop.eup %247 }
 0x104   :  { %v205_v56 = vadd.f32 1.0, %v248_v55 }
 0x106   :  { %249 = vrcp.f32 %v205_v56 }
 0x110   :  { %v250_v57 = vpop.eup %249 }
 0x111   :  { %208 = vst.msk [vmem:[#allocation3] sm:$0x1] %vm207_vm3, %v250_v57 }
 0x112   :  { %262 = shalt.err (!%p259_p4)
}
 0x113   :  { %s263_s22 = scalar_lea.hbm %s366_s5, 16 }
 0x114   :  { %p264_p5 = scmp.ne.s32.totalorder %s366_s5, %s263_s22  ;;  %p267_p6 = scmp.lt.u32.totalorder %s263_s22, %s366_s5 }
 0x116   :  { %p269_p7 = pnand %p267_p6, %p264_p5 }
 0x118   :  { %272 = shalt.err (!%p269_p7)
}
 0x119   :  { %218 = dma.vmem_to_hbm [thread:$0]  %s216_s18, 16, %s366_s5, [#allocation4]  }
 0x11a   :  { %273 = dma.done.wait [#allocation4], 16  }
 0x11b   :  { %274 = vsyncadd [#allocation4], 4294967280 }
 0x11c   :  { %222 = vsyncpa [#allocation4], 1 }

</bundles_post_ra>
